<compile_context>
chip_gen: v6e
topology: v6e:2x2x1
jax: 0.10.0
libtpu: 0.0.40
codegen_flags: <defaults>
</compile_context>

<pallas_src>
import jax
import jax.numpy as jnp
from jax.experimental import pallas as pl
from jax.experimental.pallas import tpu as pltpu

F_FEAT = 32  # stand-in feature width (plays the role of 1280 for efficientnet-b0)


# ---------------------------------------------------------------------------
# Fused kernel: per-view feature extraction + fc contraction, accumulated over views.
# Grid: (2,) over views.  Output logits are produced transposed, (2, B), so every
# in-kernel tensor keeps its natural layout; the wrapper transposes the tiny result.
# ---------------------------------------------------------------------------
def _fused_kernel(x_ref, cw_ref, cb_ref, fw_ref, fb_ref, o_ref, acc_ref):
    # x_ref  : (B, 1, 3, HW)  one view of the input (compute dtype), spatial on lanes
    # cw_ref : (F, 3)         conv weight, transposed -> lane-dense (F, HW) features
    # cb_ref : (F, 1)  f32    conv bias
    # fw_ref : (1, 2, F, HW)  fc-weight slab for this view (pre-permuted / pre-scaled)
    # fb_ref : (2, 1)  f32    fc bias
    # o_ref  : (2, B)  f32    transposed logits (wrapper transposes back)
    # acc_ref: (2, B)  f32    scratch, accumulates over the two views
    v = pl.program_id(0)

    @pl.when(v == 0)
    def _init():
        acc_ref[...] = jnp.zeros_like(acc_ref)

    cw = cw_ref[...]                          # (F, 3)
    cb = cb_ref[...]                          # (F, 1)
    fw = fw_ref[0].astype(jnp.float32)        # (2, F, HW)

    nb = x_ref.shape[0]
    cols = []
    # Static unroll over batch; B is small here.
    # TODO(synk): switch to lax.fori_loop / a batch grid axis for large B.
    for b in range(nb):
        # Stand-in backbone: 1x1 conv + bias + ReLU, lane-dense (F, HW) output on MXU.
        feats = jnp.dot(cw, x_ref[b, 0], preferred_element_type=jnp.float32)  # (F, HW)
        feats = jnp.maximum(feats + cb, 0.0)
        # Fused fc contribution of this (view, batch): <feats, fw[n]> for n in {0, 1}.
        # TODO(synk): at real backbone width (F=1280) use an MXU contraction over a
        # flattened (F*HW) axis instead of this VPU mul + reduce.
        t = jnp.sum(fw * feats[None, :, :], axis=-1)        # (2, F)
        cols.append(jnp.sum(t, axis=-1, keepdims=True))     # (2, 1)

    acc_ref[...] += jnp.concatenate(cols, axis=-1)          # (2, B)

    @pl.when(v == pl.num_programs(0) - 1)
    def _finalize():
        o_ref[...] = acc_ref[...] + fb_ref[...]


# ---------------------------------------------------------------------------
# Model wrapper: parameter prep (all layout permutes happen once, at __init__)
# ---------------------------------------------------------------------------
class SideFCBreastModelPallas:
    def __init__(self, key, *, avgpool=False, feat=F_FEAT, H=16, W=16,
                 compute_dtype=jnp.bfloat16):
        self.avgpool_flag = avgpool
        self.feat = feat
        self.H, self.W = H, W
        self.compute_dtype = compute_dtype
        HW = H * W

        k1, k2, k3, k4 = jax.random.split(key, 4)
        # PyTorch-layout parameters (the pure-JAX reference uses these directly).
        self.conv_w = 0.1 * jax.random.normal(k1, (3, feat), jnp.float32)
        self.conv_b = 0.1 * jax.random.normal(k2, (feat,), jnp.float32)
        inplanes = feat * 2 if avgpool else feat * 2 * H * W
        # nn.Linear(inplanes, 2): weight (2, inplanes), bias (2,)
        self.fc_w = 0.01 * jax.random.normal(k3, (2, inplanes), jnp.float32)
        self.fc_b = 0.01 * jax.random.normal(k4, (2,), jnp.float32)

        # ---- kernel-layout parameter prep (once, outside the hot path) ----
        self._cw = jnp.asarray(self.conv_w.T, compute_dtype)            # (F, 3)
        self._cb = self.conv_b.reshape(feat, 1).astype(jnp.float32)     # (F, 1)
        self._fb = self.fc_b.reshape(2, 1).astype(jnp.float32)          # (2, 1)
        if avgpool:
            # AdaptiveAvgPool2d((1,1)) folded into the fc weight: broadcast over the
            # spatial axis and scale by 1/HW (same math, different summation order).
            fw4 = jnp.broadcast_to((self.fc_w / HW).reshape(2, 2, feat, 1),
                                   (2, 2, feat, HW))
        else:
            # torch.flatten(x, 1) of cat([x1, x2], dim=1) in NCHW: the K axis decomposes
            # as (view, feature, spatial); pre-permute so the kernel consumes it in its
            # native (view, class, F, HW) order -> no runtime activation transposes.
            fw4 = self.fc_w.reshape(2, 2, feat, HW)
        self._fw = jnp.transpose(fw4, (1, 0, 2, 3)).astype(compute_dtype)  # (2v, 2n, F, HW)

    def __call__(self, x):
        # x: (B, 6, H, W) NCHW; views are channels [0:3] and [3:6]
        B, C, H, W = x.shape
        assert C == 6 and H == self.H and W == self.W
        HW = H * W
        F = self.feat

        # Free reshape (NCHW is contiguous): (B, 6, H, W) -> (B, view, 3, H*W).
        xr = x.astype(self.compute_dtype).reshape(B, 2, 3, HW)

        out_t = pl.pallas_call(
            _fused_kernel,
            out_shape=jax.ShapeDtypeStruct((2, B), jnp.float32),
            grid_spec=pltpu.PrefetchScalarGridSpec(
                num_scalar_prefetch=0,
                grid=(2,),  # views (reduction axis; logits accumulate in VMEM)
                in_specs=[
                    pl.BlockSpec((B, 1, 3, HW), lambda v: (0, v, 0, 0)),   # x, one view
                    pl.BlockSpec((F, 3), lambda v: (0, 0)),                # conv w
                    pl.BlockSpec((F, 1), lambda v: (0, 0)),                # conv b
                    pl.BlockSpec((1, 2, F, HW), lambda v: (v, 0, 0, 0)),   # fc w slab
                    pl.BlockSpec((2, 1), lambda v: (0, 0)),                # fc b
                ],
                out_specs=pl.BlockSpec((2, B), lambda v: (0, 0)),
                scratch_shapes=[pltpu.VMEM((2, B), jnp.float32)],
            ),
            # Single reduction axis -> "arbitrary".  At real backbone sizes add a
            # parallel spatial/batch grid axis (even step count for v7x's 2 TCs).
            compiler_params=pltpu.CompilerParams(
                dimension_semantics=("arbitrary",)),
        )(xr, self._cw, self._cb, self._fw, self._fb)

        return out_t.T  # (B, 2)

    # Pure-JAX f32 reference of the same synthetic forward pass (PyTorch semantics).
    def reference(self, x):
        B = x.shape[0]
        H, W, F = self.H, self.W, self.feat

        def core(v):
            r = jnp.transpose(v, (0, 2, 3, 1)).reshape(-1, 3)
            f = jnp.maximum(r @ self.conv_w + self.conv_b, 0.0)
            return jnp.transpose(f.reshape(B, H, W, F), (0, 3, 1, 2))

        h = jnp.concatenate([core(x[:, 0:3]), core(x[:, 3:6])], axis=1)
        if self.avgpool_flag:
            h = jnp.mean(h, axis=(2, 3), keepdims=True)
        return h.reshape(B, -1) @ self.fc_w.T + self.fc_b


if __name__ == "__main__":
    key = jax.random.PRNGKey(0)
    kx, kp = jax.random.split(key)
    B, H, W = 2, 16, 16
    x = jax.random.normal(kx, (B, 6, H, W), jnp.float32)

    # avgpool=False path (flatten full feature maps, fc over 2*F*H*W)
    model = SideFCBreastModelPallas(kp, avgpool=False, H=H, W=W)
    out = jax.block_until_ready(model(x))
    assert out.shape == (B, 2), out.shape
    ref = model.reference(x)
    assert jnp.allclose(out, ref, atol=5e-2, rtol=5e-2), (out, ref)  # bf16 compute vs f32 ref

    # avgpool=True path (AdaptiveAvgPool2d folded into the fc weight)
    model_ap = SideFCBreastModelPallas(kp, avgpool=True, H=H, W=W)
    out_ap = jax.block_until_ready(model_ap(x))
    assert out_ap.shape == (B, 2), out_ap.shape
    ref_ap = model_ap.reference(x)
    assert jnp.allclose(out_ap, ref_ap, atol=5e-2, rtol=5e-2), (out_ap, ref_ap)

    print("KERNEL_OK")
</pallas_src>

<mosaic_0001>
module attributes {stable_mosaic.version = 11 : i64} {
  func.func @_fused_kernel(%arg0: i32, %arg1: memref<2x1x3x256xbf16, #tpu.memory_space<vmem>>, %arg2: memref<32x3xbf16, #tpu.memory_space<vmem>>, %arg3: memref<32x1xf32, #tpu.memory_space<vmem>>, %arg4: memref<1x2x32x256xbf16, #tpu.memory_space<vmem>>, %arg5: memref<2x1xf32, #tpu.memory_space<vmem>>, %arg6: memref<2x2xf32, #tpu.memory_space<vmem>>, %arg7: memref<2x2xf32, #tpu.memory_space<vmem>>) attributes {dimension_semantics = [#tpu.dimension_semantics<arbitrary>], iteration_bounds = array<i64: 2>, scalar_prefetch = 0 : i64, scratch_operands = 1 : i64, tpu.core_type = #tpu.core_type<tc>, window_params = [{transform_indices = @transform_0, window_bounds = array<i64: 2, 1, 3, 256>}, {pipeline_mode = #tpu.pipeline_mode<synchronous>, transform_indices = @transform_1, window_bounds = array<i64: 32, 3>}, {pipeline_mode = #tpu.pipeline_mode<synchronous>, transform_indices = @transform_2, window_bounds = array<i64: 32, 1>}, {transform_indices = @transform_3, window_bounds = array<i64: 1, 2, 32, 256>}, {pipeline_mode = #tpu.pipeline_mode<synchronous>, transform_indices = @transform_4, window_bounds = array<i64: 2, 1>}, {pipeline_mode = #tpu.pipeline_mode<synchronous>, transform_indices = @transform_5, window_bounds = array<i64: 2, 2>}]} {
    %c0_i32 = arith.constant 0 : i32
    %0 = arith.cmpi eq, %arg0, %c0_i32 : i32
    %1 = arith.extui %0 : i1 to i32
    %c0_i32_0 = arith.constant 0 : i32
    %2 = arith.cmpi ne, %1, %c0_i32_0 : i32
    scf.if %2 {
      %cst_27 = arith.constant 0.000000e+00 : f32
      %41 = vector.broadcast %cst_27 : f32 to vector<2x2xf32>
      %c0_28 = arith.constant 0 : index
      %c0_29 = arith.constant 0 : index
      %42 = vector.load %arg7[%c0_28, %c0_29] : memref<2x2xf32, #tpu.memory_space<vmem>>, vector<2x2xf32>
      tpu.vector_store %arg7[%c0_28, %c0_29], %41 {strides = array<i32>} : memref<2x2xf32, #tpu.memory_space<vmem>>, vector<2x2xf32>,
    } else {
    }
    %c0 = arith.constant 0 : index
    %c0_1 = arith.constant 0 : index
    %3 = vector.load %arg2[%c0, %c0_1] : memref<32x3xbf16, #tpu.memory_space<vmem>>, vector<32x3xbf16>
    %c0_2 = arith.constant 0 : index
    %c0_3 = arith.constant 0 : index
    %4 = vector.load %arg3[%c0_2, %c0_3] : memref<32x1xf32, #tpu.memory_space<vmem>>, vector<32x1xf32>
    %c0_4 = arith.constant 0 : index
    %c0_5 = arith.constant 0 : index
    %c0_6 = arith.constant 0 : index
    %c0_7 = arith.constant 0 : index
    %5 = vector.load %arg4[%c0_4, %c0_5, %c0_6, %c0_7] : memref<1x2x32x256xbf16, #tpu.memory_space<vmem>>, vector<1x2x32x256xbf16>
    %6 = vector.shape_cast %5 : vector<1x2x32x256xbf16> to vector<2x32x256xbf16>
    %7 = arith.extf %6 : vector<2x32x256xbf16> to vector<2x32x256xf32>
    %c0_8 = arith.constant 0 : index
    %c0_9 = arith.constant 0 : index
    %c0_10 = arith.constant 0 : index
    %c0_11 = arith.constant 0 : index
    %8 = vector.load %arg1[%c0_8, %c0_9, %c0_10, %c0_11] : memref<2x1x3x256xbf16, #tpu.memory_space<vmem>>, vector<1x1x3x256xbf16>
    %9 = vector.shape_cast %8 : vector<1x1x3x256xbf16> to vector<3x256xbf16>
    %cst = arith.constant dense<0.000000e+00> : vector<32x256xf32>
    %10 = tpu.matmul %3, %9, %cst {dimension_numbers = #tpu.dot_dimension_numbers<[1], [0], [0], [1], [0, 0, 1, 1], [], []>} : vector<32x3xbf16>, vector<3x256xbf16>, vector<32x256xf32> -> vector<32x256xf32>
    %11 = vector.broadcast %4 : vector<32x1xf32> to vector<32x256xf32>
    %12 = arith.addf %10, %11 : vector<32x256xf32>
    %cst_12 = arith.constant 0.000000e+00 : f32
    %13 = vector.broadcast %cst_12 : f32 to vector<32x256xf32>
    %14 = arith.maximumf %12, %13 : vector<32x256xf32>
    %15 = vector.shape_cast %14 : vector<32x256xf32> to vector<1x32x256xf32>
    %16 = vector.broadcast %15 : vector<1x32x256xf32> to vector<2x32x256xf32>
    %17 = arith.mulf %7, %16 : vector<2x32x256xf32>
    %cst_13 = arith.constant dense<0.000000e+00> : vector<2x32xf32>
    %18 = vector.multi_reduction <add>, %17, %cst_13 [2] : vector<2x32x256xf32> to vector<2x32xf32>
    %cst_14 = arith.constant dense<0.000000e+00> : vector<2xf32>
    %19 = vector.multi_reduction <add>, %18, %cst_14 [1] : vector<2x32xf32> to vector<2xf32>
    %20 = vector.shape_cast %19 : vector<2xf32> to vector<2x1xf32>
    %c1 = arith.constant 1 : index
    %c0_15 = arith.constant 0 : index
    %c0_16 = arith.constant 0 : index
    %c0_17 = arith.constant 0 : index
    %21 = vector.load %arg1[%c1, %c0_15, %c0_16, %c0_17] : memref<2x1x3x256xbf16, #tpu.memory_space<vmem>>, vector<1x1x3x256xbf16>
    %22 = vector.shape_cast %21 : vector<1x1x3x256xbf16> to vector<3x256xbf16>
    %cst_18 = arith.constant dense<0.000000e+00> : vector<32x256xf32>
    %23 = tpu.matmul %3, %22, %cst_18 {dimension_numbers = #tpu.dot_dimension_numbers<[1], [0], [0], [1], [0, 0, 1, 1], [], []>} : vector<32x3xbf16>, vector<3x256xbf16>, vector<32x256xf32> -> vector<32x256xf32>
    %24 = vector.broadcast %4 : vector<32x1xf32> to vector<32x256xf32>
    %25 = arith.addf %23, %24 : vector<32x256xf32>
    %cst_19 = arith.constant 0.000000e+00 : f32
    %26 = vector.broadcast %cst_19 : f32 to vector<32x256xf32>
    %27 = arith.maximumf %25, %26 : vector<32x256xf32>
    %28 = vector.shape_cast %27 : vector<32x256xf32> to vector<1x32x256xf32>
    %29 = vector.broadcast %28 : vector<1x32x256xf32> to vector<2x32x256xf32>
    %30 = arith.mulf %7, %29 : vector<2x32x256xf32>
    %cst_20 = arith.constant dense<0.000000e+00> : vector<2x32xf32>
    %31 = vector.multi_reduction <add>, %30, %cst_20 [2] : vector<2x32x256xf32> to vector<2x32xf32>
    %cst_21 = arith.constant dense<0.000000e+00> : vector<2xf32>
    %32 = vector.multi_reduction <add>, %31, %cst_21 [1] : vector<2x32xf32> to vector<2xf32>
    %33 = vector.shape_cast %32 : vector<2xf32> to vector<2x1xf32>
    %c0_22 = arith.constant 0 : index
    %c0_23 = arith.constant 0 : index
    %34 = vector.load %arg7[%c0_22, %c0_23] : memref<2x2xf32, #tpu.memory_space<vmem>>, vector<2x2xf32>
    %35 = tpu.concatenate %20, %33 in 1 : vector<2x1xf32>, vector<2x1xf32> -> vector<2x2xf32>
    %36 = arith.addf %34, %35 : vector<2x2xf32>
    %c0_24 = arith.constant 0 : index
    %c0_25 = arith.constant 0 : index
    %37 = vector.load %arg7[%c0_24, %c0_25] : memref<2x2xf32, #tpu.memory_space<vmem>>, vector<2x2xf32>
    tpu.vector_store %arg7[%c0_24, %c0_25], %36 {strides = array<i32>} : memref<2x2xf32, #tpu.memory_space<vmem>>, vector<2x2xf32>,
    %c1_i32 = arith.constant 1 : i32
    %38 = arith.cmpi eq, %arg0, %c1_i32 : i32
    %39 = arith.extui %38 : i1 to i32
    %c0_i32_26 = arith.constant 0 : i32
    %40 = arith.cmpi ne, %39, %c0_i32_26 : i32
    scf.if %40 {
      %c0_27 = arith.constant 0 : index
      %c0_28 = arith.constant 0 : index
      %41 = vector.load %arg7[%c0_27, %c0_28] : memref<2x2xf32, #tpu.memory_space<vmem>>, vector<2x2xf32>
      %c0_29 = arith.constant 0 : index
      %c0_30 = arith.constant 0 : index
      %42 = vector.load %arg5[%c0_29, %c0_30] : memref<2x1xf32, #tpu.memory_space<vmem>>, vector<2x1xf32>
      %43 = vector.broadcast %42 : vector<2x1xf32> to vector<2x2xf32>
      %44 = arith.addf %41, %43 : vector<2x2xf32>
      %c0_31 = arith.constant 0 : index
      %c0_32 = arith.constant 0 : index
      %45 = vector.load %arg6[%c0_31, %c0_32] : memref<2x2xf32, #tpu.memory_space<vmem>>, vector<2x2xf32>
      tpu.vector_store %arg6[%c0_31, %c0_32], %44 {strides = array<i32>} : memref<2x2xf32, #tpu.memory_space<vmem>>, vector<2x2xf32>,
    } else {
    }
    return
  }
  func.func @transform_0(%arg0: i32) -> (i32, i32, i32, i32) {
    %c0_i32 = arith.constant 0 : i32
    %c0_i32_0 = arith.constant 0 : i32
    %c0_i32_1 = arith.constant 0 : i32
    %c0_i32_2 = arith.constant 0 : i32
    return %c0_i32, %arg0, %c0_i32_0, %c0_i32_1 : i32, i32, i32, i32
  }
  func.func @transform_1(%arg0: i32) -> (i32, i32) {
    %c0_i32 = arith.constant 0 : i32
    %c0_i32_0 = arith.constant 0 : i32
    %c0_i32_1 = arith.constant 0 : i32
    return %c0_i32, %c0_i32_0 : i32, i32
  }
  func.func @transform_2(%arg0: i32) -> (i32, i32) {
    %c0_i32 = arith.constant 0 : i32
    %c0_i32_0 = arith.constant 0 : i32
    %c0_i32_1 = arith.constant 0 : i32
    return %c0_i32, %c0_i32_0 : i32, i32
  }
  func.func @transform_3(%arg0: i32) -> (i32, i32, i32, i32) {
    %c0_i32 = arith.constant 0 : i32
    %c0_i32_0 = arith.constant 0 : i32
    %c0_i32_1 = arith.constant 0 : i32
    %c0_i32_2 = arith.constant 0 : i32
    return %arg0, %c0_i32, %c0_i32_0, %c0_i32_1 : i32, i32, i32, i32
  }
  func.func @transform_4(%arg0: i32) -> (i32, i32) {
    %c0_i32 = arith.constant 0 : i32
    %c0_i32_0 = arith.constant 0 : i32
    %c0_i32_1 = arith.constant 0 : i32
    return %c0_i32, %c0_i32_0 : i32, i32
  }
  func.func @transform_5(%arg0: i32) -> (i32, i32) {
    %c0_i32 = arith.constant 0 : i32
    %c0_i32_0 = arith.constant 0 : i32
    %c0_i32_1 = arith.constant 0 : i32
    return %c0_i32, %c0_i32_0 : i32, i32
  }
}

</mosaic_0001>

<bundles_post_ra>
// kernel: tpu_custom_call.1
= control target key start
LH: loop header
LB: loop body
LE: loop exit
PB: predicated region body
PF: predicated region fallthrough
CT: control target
= control target key end

     0   :  { %10 = vsyncpa [#allocation5], 0  ;;  %s1210_s0 = inlined_call_operand.vmem [shape: bf16[2,2,3,256], index: 0, kind: input, shape index: {}]   ;;  %s1211_s1 = inlined_call_operand.vmem [shape: bf16[32,3], index: 1, kind: input, shape index: {}]   ;;  %s1212_s2 = inlined_call_operand.vmem [shape: f32[32,1], index: 2, kind: input, shape index: {}]   ;;  %s1213_s3 = inlined_call_operand.hbm [shape: bf16[2,2,32,256], index: 3, kind: input, shape index: {}]   ;;  %s1214_s4 = inlined_call_operand.vmem [shape: f32[2,1], index: 4, kind: input, shape index: {}]   ;;  %s1215_s5 = inlined_call_operand.hbm [shape: f32[2,2], index: 5, kind: output, shape index: {}]  }
   0x1   :  { %12 = vsyncpa [#allocation5 + $0x1], 0 }
   0x2   :  { %13 = vsyncpa [#allocation6], 0  ;;  %s1029_s18 = smov 0   ;;  %s1031_s19 = smov 0  }
   0x3   :  { %s1033_s20 = smov 0   ;;  %s1035_s21 = smov 0  }
   0x4 LB: > { %s1048_s22 = sadd.s32 4294967295, %s989_s21   ;;  %s1051_s23 = sadd.s32 1, %s989_s21   ;;  %s989_s21 = sphi %s1035_s21, %s1221_s21   ;;  %s985_s20 = sphi %s1033_s20, %s1220_s20   ;;  %s981_s19 = sphi %s1031_s19, %s1219_s19   ;;  %s977_s18 = sphi %s1029_s18, %s1218_s18  }
   0x5   : > { %s23_s24 = ssub.s32 %s989_s21, %s1051_s23  ;;  %s26_s25 = sadd.s32 1, %s985_s20 }
   0x6   : > { %p24_p0 = scmp.eq.s32.totalorder %s23_s24, 0  ;;  %p33_p1 = scmp.ne.s32.totalorder %s985_s20, %s981_s19 }
   0x7   : > { %p34_p2 = scmp.eq.s32.totalorder %s989_s21, 0  ;;  %p107_p3 = scmp.ne.s32.totalorder %s981_s19, %s977_s18 }
   0x8   : > { %s1061_s26 = scalar_select %p24_p0, %s985_s20, %s26_s25  }
   0x9   : > { %p1063_p4 = por %p34_p2, %p33_p1  ;;  %p108_p5 = scmp.eq.s32.totalorder %s1048_s22, 0 }
   0xa   : > { %p822_p7 = scmp.ge.s32.totalorder %s989_s21, 2 }
   0xb   : > { %p1068_p6 = por %p108_p5, %p107_p3 }
   0xc   : > { %178 = sbr.rel (%p822_p7) target bundleno = 47 (0x2f), region = 28 }
  0x11   : > { %181 = sbr.rel (!%p1063_p4) target bundleno = 22 (0x16), region = 32  ;;  %s183_s29 = sand.u32 (%p1063_p4), 1, %s985_s20  }
  0x12   : > { %s847_s30 = sshll.u32 (%p1063_p4), %s989_s21, 2  ;;  %s823_s6 = sshll.u32 (%p1063_p4), %s183_s29, 3 }
  0x13   : > { %s188_s9 = scalar_lea.vmem (%p1063_p4), %s1210_s0, %s847_s30  ;;  %s185_s10 = scalar_lea.vmem (%p1063_p4), [#allocation3], %s823_s6 }
  0x14   : > { %v205_v0 = vld [vmem:[%s188_s9] sm:$0xf] (%p1063_p4)  ;;  %v207_v1 = vld [vmem:[%s188_s9 + $0x8] sm:$0xf] (%p1063_p4) }
  0x15   : > { %206 = vst [vmem:[%s185_s10] sm:$0xf] (%p1063_p4), %v205_v0  ;;  %208 = vst [vmem:[%s185_s10 + $0x4] sm:$0xf] (%p1063_p4), %v207_v1 }
  0x16 PF: > { %s237_s11 = sand.u32 1, %s985_s20   ;;  %s848_s12 = sshll.u32 %s989_s21, 10 }
  0x17   : > { %s826_s13 = sshll.u32 %s237_s11, 6  ;;  %s1085_s16 = scalar_lea.hbm %s1213_s3, %s848_s12 }
  0x18   : > { %s241_s17 = scalar_lea.vmem [#allocation4], %s826_s13  ;;  %s1089_s24 = scalar_lea.sflag [#allocation5], %s237_s11 }
  0x19   : > { %s248_s18 = sshll.u32 %s241_s17, 4  ;;  %s901_s25 = scalar_lea.hbm %s1085_s16, 1024  ;;  %s1087_s18 = int_to_ptr.vmem [resolvable:$true] %s248_s18 }
  0x1a   : > { %p902_p8 = scmp.ne.s32.totalorder %s1085_s16, %s901_s25  ;;  %s905_s6 = scalar_lea.hbm %s1213_s3, 2048 }
  0x1b   : > { %p906_p11 = scmp.lt.s32.totalorder %s1085_s16, %s1213_s3  ;;  %p907_p12 = scmp.lt.s32.totalorder %s905_s6, %s901_s25 }
  0x1c   : > { %p903_p9 = pnand %p902_p8, %p1063_p4 }
  0x1d   : > { %p908_p13 = por %p907_p12, %p906_p11 }
  0x1e   : > { %p904_p10 = pneg %p903_p9 }
  0x20   : > { %p909_p0 = pnand %p908_p13, %p904_p10 }
  0x22   : > { %912 = shalt.err (!%p909_p0)
}
  0x23   : > { %s913_s9 = scalar_lea.vmem %s1087_s18, 1024  ;;  %s991_s10 = smov [#allocation4]  }
  0x24   : > { %p914_p1 = scmp.ne.s32.totalorder %s1087_s18, %s913_s9  ;;  %s917_s11 = sshll.u32 %s991_s10, 4  ;;  %s918_s11 = int_to_ptr.vmem [resolvable:$false] %s917_s11 }
  0x25   : > { %s919_s12 = scalar_lea.vmem %s918_s11, 2048  ;;  %p920_p5 = scmp.lt.s32.totalorder %s1087_s18, %s918_s11 }
  0x26   : > { %p915_p2 = pnand %p914_p1, %p1063_p4  ;;  %p921_p7 = scmp.lt.s32.totalorder %s919_s12, %s913_s9 }
  0x28   : > { %p916_p3 = pneg %p915_p2  ;;  %p922_p8 = por %p921_p7, %p920_p5 }
  0x2a   : > { %p923_p9 = pnand %p922_p8, %p916_p3 }
  0x2c   : > { %926 = shalt.err (!%p923_p9)
}
  0x2d   : > { %s992_s13 = smov 128   ;;  %s993_s14 = smov 8  }
  0x2e   : > { %849 = dma.hbm_to_vmem [thread:$0]  (%p1063_p4), %s1085_s16, 1024, %s1087_s18, %s1089_s24, %s992_s13, %s992_s13, %s993_s14  }
  0x2f PF: > { %p829_p10 = scmp.ge.s32.totalorder %s989_s21, 1  ;;  %p256_p11 = scmp.lt.s32.totalorder %s989_s21, 3 }
  0x31   : > { %p257_p12 = pnand %p829_p10, %p256_p11 }
  0x32   : > { %s263_s15 = sand.u32 (!%p257_p12), 1, %s981_s19  }
  0x33   : > { %260 = sbr.rel (%p257_p12) target bundleno = 740 (0x2e4), region = 77  ;;  %s830_s17 = sshll.u32 (!%p257_p12), %s263_s15, 3 }
  0x34   : > { %s831_s25 = sshll.u32 (!%p257_p12), %s263_s15, 6  ;;  %s265_s29 = scalar_lea.vmem (!%p257_p12), [#allocation3], %s830_s17 }
  0x35   : > { %s270_s30 = scalar_lea.sflag (!%p257_p12), [#allocation5], %s263_s15  ;;  %s1115_s6 = scalar_lea.vmem (!%p257_p12), [#allocation4], %s831_s25 }
  0x38   : > { %968 = dma.done.wait (%p1068_p6), %s270_s30, 1024  }
  0x39   : > { %970 = vsyncadd (%p1068_p6), %s270_s30, 4294966272  ;;  %p832_p4 = scmp.ne.s32.totalorder %s1048_s22, 0 }
  0x3b   : > { %303 = sbr.rel (%p832_p4) target bundleno = 66 (0x42), region = 89 }
  0x40   : > { %vm304_vm0 = vcmask 9216   ;;  %v994_v2 = vmov 0.0  }
  0x41   : > { %305 = vst.msk [vmem:[#allocation2] sm:$0x3] %vm304_vm0, %v994_v2 }
  0x42 PF: > { %v835_v3 = vld.sshfl [vmem:[%s265_s29] sm:$0x33 pattern:$0x76325410]  ;;  %vm385_vm1 = vcmask 1040384   ;;  %vm386_vm2 = vcmask 1041408  }
  0x43   : > { %v377_v4 = vcombine.high %v835_v3, %v835_v3  ;;  %v839_v5 = vld.sshfl [vmem:[%s265_s29 + $0x4] sm:$0x33 pattern:$0x76325410]  ;;  %v995_v6 = vmov 65535   ;;  %v996_v9 = vmov 0  }
  0x44   : > { %v387_v7 = vsel %vm385_vm1, 4294967295, %v995_v6  ;;  %v567_v8 = vcombine.high %v839_v5, %v839_v5  ;;  %427 = vmatprep.mubr.bf16.mxu0 %v996_v9  ;;  %606 = vmatprep.mubr.bf16.mxu1 %v996_v9  ;;  %v310_v15 = vld [vmem:[%s1212_s2] sm:$0xff]  ;;  %v312_v16 = vld [vmem:[%s1212_s2 + $0x10] sm:$0xff]  ;;  %v311_v18 = vld [vmem:[%s1212_s2 + $0x8] sm:$0xff]  ;;  %vm378_vm3 = vcmask 23552   ;;  %vm515_vm4 = vcmask 130112  }
  0x45   : > { %v388_v10 = vsel %vm386_vm2, %v387_v7, 0  ;;  %896 = vset.pattern.permute.xlu0 %v996_v9  ;;  %897 = vset.pattern.permute.xlu1 %v996_v9  ;;  %v898_v17 = vld [vmem:[%s1211_s1] sm:$0xff]   ;;  %v313_v19 = vld [vmem:[%s1212_s2 + $0x18] sm:$0xff]  ;;  %v899_v20 = vld [vmem:[%s1211_s1 + $0x8] sm:$0xff]   ;;  %vm522_vm5 = vcmask 195712   ;;  %vm529_vm6 = vcmask 261312  }
  0x46   : > { %v393_v11 = vand.u32 %v388_v10, %v377_v4  ;;  %v572_v12 = vand.u32 %v567_v8, %v388_v10  ;;  %v390_v13 = vand.u32 %v835_v3, %v388_v10  ;;  %v569_v14 = vand.u32 %v839_v5, %v388_v10  ;;  %341 = vperm.xlu0 %896, %v310_v15   ;;  %v314_v24 = vld [vmem:[%s1115_s6] sm:$0xff]  ;;  %v1143_v43 = vld [vmem:[%s1115_s6 + $0x8] sm:$0xff]  ;;  %v316_v59 = vld [vmem:[%s1115_s6 + $0x10] sm:$0xff]  ;;  %p842_p6 = scmp.ne.s32.totalorder %s1048_s22, 1 }
  0x47   : > { %351 = vperm.xlu1 %897, %v312_v16   ;;  %v318_v32 = vld [vmem:[%s1115_s6 + $0x20] sm:$0xff]  ;;  %v322_v33 = vunpack.c.l.bf16 %v314_v24  ;;  %v323_v35 = vunpack.c.h.bf16 %v314_v24  ;;  %v1146_v51 = vld [vmem:[%s1115_s6 + $0x28] sm:$0xff]  ;;  %v324_v56 = vunpack.c.l.bf16 %v1143_v43  ;;  %v325_v57 = vunpack.c.h.bf16 %v1143_v43 }
  0x48   : > { %409 = vmatprep.subr.bf16.mxu0 %v393_v11  ;;  %588 = vmatprep.subr.bf16.mxu1 %v572_v12  ;;  %v331_v40 = vunpack.c.h.bf16 %v318_v32  ;;  %v330_v46 = vunpack.c.l.bf16 %v318_v32  ;;  %v332_v3 = vunpack.c.l.bf16 %v1146_v51  ;;  %v333_v4 = vunpack.c.h.bf16 %v1146_v51 }
  0x49   : > { %410 = vmatpush1.bf16.msra.mxu0 %v390_v13  ;;  %589 = vmatpush1.bf16.msra.mxu1 %v569_v14  ;;  %vm550_vm7 = vcmask 1041409   ;;  %vm553_vm8 = vcmask 254976   ;;  %vm727_vm9 = vcmask 7168   ;;  %vm730_vm10 = vcmask 9216  }
  0x4a   : > { %346 = vperm.xlu0 %896, %v311_v18  }
  0x4b   : > { %356 = vperm.xlu1 %897, %v313_v19  }
  0x4c   : > { %836 = vmatmul.mubr.msk.bf16.vlgmr.msra.gmra.mxu0 %vm378_vm3, %v898_v17  ;;  %840 = vmatmul.mubr.msk.bf16.vlgmr.msra.gmra.mxu1 %vm378_vm3, %v898_v17  ;;  %v326_v17 = vunpack.c.l.bf16 %v316_v59 }
  0x4d   : > { %437 = vmatprep.mubr.bf16.mxu0 %v996_v9  ;;  %616 = vmatprep.mubr.bf16.mxu1 %v996_v9  ;;  %v327_v9 = vunpack.c.h.bf16 %v316_v59 }
  0x54   : > { %837 = vmatmul.mubr.msk.bf16.gmra.mxu0 %vm378_vm3, %v899_v20  ;;  %841 = vmatmul.mubr.msk.bf16.gmra.mxu1 %vm378_vm3, %v899_v20 }
  0xc1   : > { %v342_v21 = vpop.permute.xlu0 %341 }
  0xc2   : > { %v352_v58 = vpop.permute.xlu1 %351 }
  0xc5   : > { %v347_v38 = vpop.permute.xlu0 %346 }
  0xc6   : > { %v357_v18 = vpop.permute.xlu1 %356 }
 0x10c   : > { %v429_v22 = vpop.f32.mrf.mxu0  ;;  %v608_v23 = vpop.f32.mrf.mxu1 }
 0x10d   : > { %v430_v25 = vadd.f32 %v429_v22, %v342_v21  ;;  %v609_v26 = vadd.f32 %v608_v23, %v342_v21 }
 0x10e   : > { %v431_v27 = vpop.f32.mrf.mxu0  ;;  %v610_v28 = vpop.f32.mrf.mxu1 }
 0x10f   : > { %v627_v29 = vmax.f32 %v609_v26, 0.0  ;;  %v432_v30 = vadd.f32 %v431_v27, %v342_v21  ;;  %v611_v31 = vadd.f32 %v610_v28, %v342_v21  ;;  %v448_v34 = vmax.f32 %v430_v25, 0.0 }
 0x110   : > { %v433_v36 = vpop.f32.mrf.mxu0  ;;  %v612_v37 = vpop.f32.mrf.mxu1 }
 0x111   : > { %v635_v39 = vmul.f32 %v627_v29, %v322_v33  ;;  %v449_v41 = vmax.f32 %v432_v30, 0.0  ;;  %v628_v42 = vmax.f32 %v611_v31, 0.0  ;;  %v456_v48 = vmul.f32 %v448_v34, %v322_v33 }
 0x112   : > { %v435_v44 = vpop.f32.mrf.mxu0  ;;  %v614_v45 = vpop.f32.mrf.mxu1  ;;  %v434_v52 = vadd.f32 %v433_v36, %v347_v38  ;;  %v643_v55 = vmul.f32 %v627_v29, %v330_v46  ;;  %v464_v6 = vmul.f32 %v448_v34, %v330_v46  ;;  %v613_v11 = vadd.f32 %v612_v37, %v347_v38  ;;  %v317_v34 = vld [vmem:[%s1115_s6 + $0x18] sm:$0xff] }
 0x113   : > { %v436_v47 = vadd.f32 %v435_v44, %v347_v38  ;;  %v457_v49 = vmul.f32 %v449_v41, %v323_v35  ;;  %v636_v50 = vmul.f32 %v628_v42, %v323_v35  ;;  %v644_v60 = vmul.f32 %v628_v42, %v331_v40 }
 0x114   : > { %v439_v53 = vpop.f32.mrf.mxu0  ;;  %v618_v54 = vpop.f32.mrf.mxu1  ;;  %v465_v2 = vmul.f32 %v449_v41, %v331_v40  ;;  %v615_v5 = vadd.f32 %v614_v45, %v347_v38  ;;  %v450_v7 = vmax.f32 %v434_v52, 0.0  ;;  %v629_v30 = vmax.f32 %v613_v11, 0.0  ;;  %v320_v40 = vld [vmem:[%s1115_s6 + $0x30] sm:$0xff] }
 0x115   : > { %v451_v61 = vmax.f32 %v436_v47, 0.0  ;;  %v651_v62 = vadd.f32 %v636_v50, %v635_v39  ;;  %v472_v63 = vadd.f32 %v457_v49, %v456_v48  ;;  %v1153_v8 = vadd.f32 %v439_v53, %v352_v58 }
 0x116   : > { %v441_v0 = vpop.f32.mrf.mxu0  ;;  %v620_v1 = vpop.f32.mrf.mxu1  ;;  %v1155_v13 = vadd.f32 %v618_v54, %v352_v58  ;;  %v663_v16 = vadd.f32 %v644_v60, %v643_v55  ;;  %v630_v20 = vmax.f32 %v615_v5, 0.0  ;;  %v484_v22 = vadd.f32 %v465_v2, %v464_v6 }
 0x117   : > { %652 = vadd.xlane.f32.xlu1 %v651_v62  ;;  %473 = vadd.xlane.f32.xlu0 %v472_v63  ;;  %v442_v12 = vadd.f32 %v441_v0, %v352_v58  ;;  %v1157_v14 = vadd.f32 %v620_v1, %v352_v58  ;;  %v459_v15 = vmul.f32 %v451_v61, %v325_v57  ;;  %v452_v28 = vmax.f32 %v1153_v8, 0.0  ;;  %v321_v62 = vld [vmem:[%s1115_s6 + $0x38] sm:$0xff] }
 0x118   : > { %v443_v10 = vpop.f32.mrf.mxu0  ;;  %v467_v19 = vmul.f32 %v451_v61, %v333_v4  ;;  %v622_v24 = vpop.f32.mrf.mxu1  ;;  %v458_v25 = vmul.f32 %v450_v7, %v324_v56  ;;  %v631_v26 = vmax.f32 %v1155_v13, 0.0  ;;  %v466_v29 = vmul.f32 %v450_v7, %v332_v3 }
 0x119   : > { %v453_v21 = vmax.f32 %v442_v12, 0.0  ;;  %v632_v27 = vmax.f32 %v1157_v14, 0.0  ;;  %v444_v33 = vadd.f32 %v443_v10, %v357_v18  ;;  %v638_v36 = vmul.f32 %v630_v20, %v325_v57 }
 0x11a   : > { %v445_v23 = vpop.f32.mrf.mxu0  ;;  %v475_v32 = vadd.f32 %v459_v15, %v458_v25  ;;  %v487_v37 = vadd.f32 %v467_v19, %v466_v29  ;;  %v624_v38 = vpop.f32.mrf.mxu1  ;;  %v460_v39 = vmul.f32 %v452_v28, %v326_v17  ;;  %v639_v41 = vmul.f32 %v631_v26, %v326_v17 }
 0x11b   : > { %664 = vadd.xlane.f32.xlu1 %v663_v16  ;;  %v461_v31 = vmul.f32 %v453_v21, %v327_v9  ;;  %485 = vadd.xlane.f32.xlu0 %v484_v22  ;;  %v446_v35 = vadd.f32 %v445_v23, %v357_v18  ;;  %v640_v42 = vmul.f32 %v632_v27, %v327_v9  ;;  %v329_v44 = vunpack.c.h.bf16 %v317_v34 }
 0x11c   : > { %v637_v43 = vmul.f32 %v629_v30, %v324_v56  ;;  %v328_v45 = vunpack.c.l.bf16 %v317_v34  ;;  %v623_v48 = vadd.f32 %v622_v24, %v357_v18  ;;  %v625_v49 = vadd.f32 %v624_v38, %v357_v18 }
 0x11d   : > { %v478_v46 = vadd.f32 %v461_v31, %v460_v39  ;;  %v455_v47 = vmax.f32 %v446_v35, 0.0  ;;  %v454_v50 = vmax.f32 %v444_v33, 0.0  ;;  %v646_v51 = vmul.f32 %v630_v20, %v333_v4 }
 0x11e   : > { %v335_v52 = vunpack.c.h.bf16 %v320_v40  ;;  %v334_v53 = vunpack.c.l.bf16 %v320_v40  ;;  %v654_v54 = vadd.f32 %v638_v36, %v637_v43  ;;  %v657_v55 = vadd.f32 %v640_v42, %v639_v41 }
 0x11f   : > { %476 = vadd.xlane.f32.xlu1 %v475_v32  ;;  %488 = vadd.xlane.f32.xlu0 %v487_v37  ;;  %v645_v57 = vmul.f32 %v629_v30, %v332_v3  ;;  %v463_v58 = vmul.f32 %v455_v47, %v329_v44  ;;  %v633_v59 = vmax.f32 %v623_v48, 0.0  ;;  %v634_v56 = vmax.f32 %v625_v49, 0.0 }
 0x120   : > { %v462_v60 = vmul.f32 %v454_v50, %v328_v45  ;;  %v469_v61 = vmul.f32 %v453_v21, %v335_v52  ;;  %v468_v0 = vmul.f32 %v452_v28, %v334_v53  ;;  %v337_v1 = vunpack.c.h.bf16 %v321_v62 }
 0x121   : > { %v666_v63 = vadd.f32 %v646_v51, %v645_v57  ;;  %v641_v2 = vmul.f32 %v633_v59, %v328_v45  ;;  %v642_v4 = vmul.f32 %v634_v56, %v329_v44  ;;  %v647_v6 = vmul.f32 %v631_v26, %v334_v53 }
 0x122   : > { %v481_v5 = vadd.f32 %v463_v58, %v462_v60  ;;  %v648_v7 = vmul.f32 %v632_v27, %v335_v52  ;;  %v336_v8 = vunpack.c.l.bf16 %v321_v62  ;;  %v490_v9 = vadd.f32 %v469_v61, %v468_v0 }
 0x123   : > { %479 = vadd.xlane.f32.xlu1 %v478_v46  ;;  %655 = vadd.xlane.f32.xlu0 %v654_v54  ;;  %v660_v3 = vadd.f32 %v642_v4, %v641_v2  ;;  %v471_v10 = vmul.f32 %v455_v47, %v337_v1  ;;  %v650_v14 = vmul.f32 %v634_v56, %v337_v1  ;;  %v504_v23 = vlaneseq }
 0x124   : > { %v669_v11 = vadd.f32 %v648_v7, %v647_v6  ;;  %v470_v12 = vmul.f32 %v454_v50, %v336_v8  ;;  %v649_v13 = vmul.f32 %v633_v59, %v336_v8 }
 0x125   : > { %v505_v26 = vand.u32 127, %v504_v23  ;;  %v507_v30 = vshrl.u32 %v504_v23, 7 }
 0x126   : > { %v493_v15 = vadd.f32 %v471_v10, %v470_v12  ;;  %v672_v16 = vadd.f32 %v650_v14, %v649_v13 }
 0x127   : > { %658 = vadd.xlane.f32.xlu1 %v657_v55  ;;  %667 = vadd.xlane.f32.xlu0 %v666_v63  ;;  %v510_v27 = vadd.s32 4294967288, %v505_v26  ;;  %v517_v31 = vadd.s32 4294967280, %v505_v26  ;;  %v524_v32 = vadd.s32 4294967272, %v505_v26  ;;  %v508_v35 = vsub.s32 %v505_v26, %v507_v30 }
 0x129   : > { %v513_v33 = vsub.s32 %v510_v27, %v507_v30  ;;  %v520_v36 = vsub.s32 %v517_v31, %v507_v30  ;;  %v527_v38 = vsub.s32 %v524_v32, %v507_v30 }
 0x12b   : > { %482 = vadd.xlane.f32.xlu1 %v481_v5  ;;  %491 = vadd.xlane.f32.xlu0 %v490_v9 }
 0x12f   : > { %661 = vadd.xlane.f32.xlu1 %v660_v3  ;;  %670 = vadd.xlane.f32.xlu0 %v669_v11  ;;  %v726_v11 = vld [vmem:[#allocation2] sm:$0x3] }
 0x133   : > { %494 = vadd.xlane.f32.xlu0 %v493_v15 }
 0x137   : > { %673 = vadd.xlane.f32.xlu0 %v672_v16 }
 0x1a0   : > { %v653_v17 = vpop.xlane.xlu1 %652  ;;  %v474_v18 = vpop.xlane.xlu0 %473 }
 0x1a1   : > { %v509_v42 = vrot.slane %v474_v18, %v508_v35  ;;  %v686_v47 = vrot.slane %v653_v17, %v508_v35 }
 0x1a4   : > { %v665_v19 = vpop.xlane.xlu1 %664  ;;  %v486_v20 = vpop.xlane.xlu0 %485 }
 0x1a5   : > { %v534_v45 = vrot.slane %v486_v20, %v508_v35  ;;  %v705_v56 = vrot.slane %v665_v19, %v508_v35 }
 0x1a8   : > { %v477_v21 = vpop.xlane.xlu1 %476  ;;  %v489_v22 = vpop.xlane.xlu0 %488 }
 0x1a9   : > { %v514_v39 = vrot.slane %v477_v21, %v513_v33  ;;  %v538_v41 = vrot.slane %v489_v22, %v513_v33 }
 0x1ab   : > { %v516_v48 = vsel %vm515_vm4, %v514_v39, %v509_v42  ;;  %v539_v51 = vsel %vm515_vm4, %v538_v41, %v534_v45 }
 0x1ac   : > { %v480_v24 = vpop.xlane.xlu1 %479  ;;  %v656_v25 = vpop.xlane.xlu0 %655 }
 0x1ad   : > { %v521_v43 = vrot.slane %v480_v24, %v520_v36  ;;  %v690_v52 = vrot.slane %v656_v25, %v513_v33 }
 0x1af   : > { %v523_v55 = vsel %vm522_vm5, %v521_v43, %v516_v48  ;;  %v691_v1 = vsel %vm515_vm4, %v690_v52, %v686_v47 }
 0x1b0   : > { %v659_v28 = vpop.xlane.xlu1 %658  ;;  %v668_v29 = vpop.xlane.xlu0 %667 }
 0x1b1   : > { %v709_v53 = vrot.slane %v668_v29, %v513_v33  ;;  %v695_v57 = vrot.slane %v659_v28, %v520_v36 }
 0x1b3   : > { %v710_v2 = vsel %vm515_vm4, %v709_v53, %v705_v56  ;;  %v696_v6 = vsel %vm522_vm5, %v695_v57, %v691_v1 }
 0x1b4   : > { %v492_v34 = vpop.xlane.xlu0 %491  ;;  %v483_v37 = vpop.xlane.xlu1 %482 }
 0x1b5   : > { %v543_v44 = vrot.slane %v492_v34, %v520_v36  ;;  %v528_v46 = vrot.slane %v483_v37, %v527_v38 }
 0x1b7   : > { %v544_v58 = vsel %vm522_vm5, %v543_v44, %v539_v51  ;;  %v530_v61 = vsel %vm529_vm6, %v528_v46, %v523_v55 }
 0x1b8   : > { %v671_v40 = vpop.xlane.xlu0 %670  ;;  %v662_v49 = vpop.xlane.xlu1 %661 }
 0x1b9   : > { %v714_v59 = vrot.slane %v671_v40, %v520_v36  ;;  %v700_v60 = vrot.slane %v662_v49, %v527_v38 }
 0x1bb   : > { %v715_v7 = vsel %vm522_vm5, %v714_v59, %v710_v2  ;;  %v701_v8 = vsel %vm529_vm6, %v700_v60, %v696_v6 }
 0x1bc   : > { %v495_v50 = vpop.xlane.xlu0 %494 }
 0x1bd   : > { %v548_v54 = vrot.slane %v495_v50, %v527_v38 }
 0x1bf   : > { %v549_v62 = vsel %vm529_vm6, %v548_v54, %v544_v58 }
 0x1c0   : > { %v674_v63 = vpop.xlane.xlu0 %673  ;;  %v551_v0 = vsel %vm550_vm7, %v549_v62, %v530_v61 }
 0x1c1   : > { %v719_v4 = vrot.slane %v674_v63, %v527_v38  ;;  %v554_v5 = vsel %vm553_vm8, %v551_v0, 0.0 }
 0x1c2   : > { %555 = vadd.xlane.f32.xlu1 %v554_v5 }
 0x1c3   : > { %v720_v9 = vsel %vm529_vm6, %v719_v4, %v715_v7 }
 0x1c4   : > { %v721_v3 = vsel %vm550_vm7, %v720_v9, %v701_v8 }
 0x1c5   : > { %v723_v10 = vsel %vm553_vm8, %v721_v3, 0.0 }
 0x1c6   : > { %724 = vadd.xlane.f32.xlu0 %v723_v10 }
 0x24b   : > { %v556_v12 = vpop.xlane.xlu1 %555 }
 0x24f   : > { %v725_v13 = vpop.xlane.xlu0 %724  ;;  %735 = sbr.rel (%p842_p6) target bundleno = 725 (0x2d5), region = 93 }
 0x250   : > { %v728_v14 = vsel %vm727_vm9, %v556_v12, %v725_v13 }
 0x251   : > { %v729_v15 = vadd.f32 %v728_v14, %v726_v11 }
 0x253   : > { %731 = vst.msk [vmem:[#allocation2] sm:$0x3] %vm730_vm10, %v729_v15 }
 0x254   : > { %v737_v16 = vld [vmem:[%s1214_s4] sm:$0x3]  ;;  %v997_v17 = vmov 0  }
 0x255   : > { %900 = vset.pattern.permute.xlu0 %v997_v17 }
 0x256   : > { %740 = vperm.xlu0 %900, %v737_v16  }
 0x25a   : > { %v736_v18 = vld [vmem:[#allocation2] sm:$0x3] }
 0x2d1   : > { %v741_v19 = vpop.permute.xlu0 %740 }
 0x2d2   : > { %v743_v20 = vadd.f32 %v741_v19, %v736_v18 }
 0x2d4   : > { %744 = vst.msk [vmem:[#allocation7] sm:$0x3] %vm730_vm10, %v743_v20 }
 0x2d5 PF: > { %p855_p13 = scmp.eq.s32.totalorder %s1048_s22, 1  ;;  %s998_s15 = smov [#allocation7]  }
 0x2d6   : > { %s752_s17 = sshll.u32 %s998_s15, 4  ;;  %s753_s17 = int_to_ptr.vmem [resolvable:$true] %s752_s17 }
 0x2d7   : > { %s927_s25 = scalar_lea.vmem %s753_s17, 32  ;;  %p934_p3 = scmp.lt.s32.totalorder %s753_s17, %s753_s17 }
 0x2d8   : > { %p928_p0 = scmp.ne.s32.totalorder %s753_s17, %s927_s25  ;;  %p935_p5 = scmp.lt.s32.totalorder %s927_s25, %s927_s25 }
 0x2da   : > { %p929_p1 = pnand %p928_p0, %p855_p13  ;;  %p936_p7 = por %p935_p5, %p934_p3 }
 0x2dc   : > { %p930_p2 = pneg %p929_p1 }
 0x2de   : > { %p937_p8 = pnand %p936_p7, %p930_p2 }
 0x2e0   : > { %940 = shalt.err (!%p937_p8)
}
 0x2e1   : > { %852 = dma.vmem_to_hbm [thread:$0]  (%p855_p13), %s753_s17, 32, %s1215_s5, [#allocation6]  }
 0x2e2   : > { %972 = dma.done.wait (%p855_p13), [#allocation6], 32  }
 0x2e3   : > { %974 = vsyncadd (%p855_p13), [#allocation6], 4294967264 }
 0x2e4 PF: > { %p16_p9 = scmp.ge.s32.totalorder %s1051_s23, 4   ;;  %s1218_s18 = smov %s981_s19 }
 0x2e5   : > { %s1219_s19 = smov %s985_s20  ;;  %s1220_s20 = smov %s1061_s26 }
 0x2e6   : > { %s1221_s21 = smov %s1051_s23  ;;  %18 = sbr.rel (!%p16_p9) target bundleno = 4 (0x4), region = 135 }
 0x2eb   :  { %765 = vsyncpa [#allocation5], 1 }
 0x2ec   :  { %767 = vsyncpa [#allocation5 + $0x1], 1 }
 0x2ed   :  { %768 = vsyncpa [#allocation6], 1 }
 0x2ee   :  { %770 = vsyncpa [#allocation6 + $0x1], 1 }

</bundles_post_ra>
